<compile_context>
chip_gen: v7x
topology: tpu7x:2x2x1
jax: 0.10.0
libtpu: 0.0.40
codegen_flags: <defaults>
</compile_context>

<pallas_src>
import jax
import jax.numpy as jnp
from jax.experimental import pallas as pl
from jax.experimental.pallas import tpu as pltpu


NEG_SLOPE = 0.01  # PyTorch LeakyReLU default negative_slope
OUT_DIM = 9
LANE = 128
SUBLANE = 8


def _round_up(n, m):
    return ((n + m - 1) // m) * m


def _leaky_relu(x):
    return jnp.where(x > 0, x, NEG_SLOPE * x)


def tbnn_kernel(x_ref,
                w1_ref, b1_ref,
                w2_ref, b2_ref,
                w3_ref, b3_ref,
                w4_ref, b4_ref,
                wo_ref, bo_ref,
                o_ref):
    # Five MXU matmuls + bias/LeakyReLU on the VPU, fused per batch tile.
    # Weights (and x) arrive in `mxu_dtype` (bf16 by default); accumulation,
    # bias add and the activation are done in f32.
    mxu_dtype = w1_ref.dtype

    # Hoist bias reads once (JAX does not CSE broadcast_in_dim).
    b1 = b1_ref[...]
    b2 = b2_ref[...]
    b3 = b3_ref[...]
    b4 = b4_ref[...]
    bo = bo_ref[...]

    h = jnp.dot(x_ref[...], w1_ref[...], preferred_element_type=jnp.float32) + b1
    h = _leaky_relu(h)
    # TODO(synk): training-mode Dropout would need pltpu.prng_* masks; eval mode is identity.

    h = jnp.dot(h.astype(mxu_dtype), w2_ref[...],
                preferred_element_type=jnp.float32) + b2
    h = _leaky_relu(h)

    h = jnp.dot(h.astype(mxu_dtype), w3_ref[...],
                preferred_element_type=jnp.float32) + b3
    h = _leaky_relu(h)

    h = jnp.dot(h.astype(mxu_dtype), w4_ref[...],
                preferred_element_type=jnp.float32) + b4
    h = _leaky_relu(h)

    out = jnp.dot(h.astype(mxu_dtype), wo_ref[...],
                  preferred_element_type=jnp.float32) + bo
    o_ref[...] = out.astype(o_ref.dtype)


def _default_tile_n(n_rows):
    """Large tiles (amortize per-step overhead) but >=2 grid steps when
    possible so v7x's two TensorCores both get a share of the batch."""
    n8 = _round_up(n_rows, SUBLANE)
    if n8 <= 2 * SUBLANE:
        return n8  # tiny batch: one step
    half = _round_up((n8 + 1) // 2, SUBLANE)
    return min(1024, half)


def tbnn_forward(x, params, *, tile_n=None, mxu_dtype=jnp.bfloat16):
    """x: [N, input_dim] float32. params: dict of f32 weights/biases.

    Returns [N, out_dim] float32. Any N is supported (rows are zero-padded to
    a tile multiple and sliced back).
    """
    N, input_dim = x.shape
    hidden_dim = params["w1"].shape[1]
    out_dim = params["wo"].shape[1]

    if tile_n is None:
        tile_n = _default_tile_n(N)
    tile_n = _round_up(tile_n, SUBLANE)

    # Lane-dense padded sizes (the measured big lever: unmasked stores and
    # full-width vregs for the VPU work).
    in_p = _round_up(input_dim, LANE)
    hid_p = _round_up(hidden_dim, LANE)
    out_p = _round_up(out_dim, LANE)
    n_p = _round_up(N, tile_n)

    def pad2(a, rows, cols, dtype):
        a = a.astype(dtype)
        return jnp.pad(a, ((0, rows - a.shape[0]), (0, cols - a.shape[1])))

    # Zero-padding is numerically exact: padded weight rows/cols and padded
    # bias lanes are zero, so padded hidden lanes stay exactly zero through
    # LeakyReLU, and padded output lanes are sliced off at the end.
    x_p = pad2(x, n_p, in_p, mxu_dtype)
    w1 = pad2(params["w1"], in_p, hid_p, mxu_dtype)
    w2 = pad2(params["w2"], hid_p, hid_p, mxu_dtype)
    w3 = pad2(params["w3"], hid_p, hid_p, mxu_dtype)
    w4 = pad2(params["w4"], hid_p, hid_p, mxu_dtype)
    wo = pad2(params["wo"], hid_p, out_p, mxu_dtype)
    b1 = pad2(params["b1"], 1, hid_p, jnp.float32)
    b2 = pad2(params["b2"], 1, hid_p, jnp.float32)
    b3 = pad2(params["b3"], 1, hid_p, jnp.float32)
    b4 = pad2(params["b4"], 1, hid_p, jnp.float32)
    bo = pad2(params["bo"], 1, out_p, jnp.float32)

    grid = (n_p // tile_n,)

    def full_spec(shape):
        # Constant block index across the grid -> loaded once, kept resident.
        return pl.BlockSpec(shape, lambda i: (0, 0))

    in_specs = [
        pl.BlockSpec((tile_n, in_p), lambda i: (i, 0)),                 # x tile
        full_spec((in_p, hid_p)), full_spec((1, hid_p)),                # w1, b1
        full_spec((hid_p, hid_p)), full_spec((1, hid_p)),               # w2, b2
        full_spec((hid_p, hid_p)), full_spec((1, hid_p)),               # w3, b3
        full_spec((hid_p, hid_p)), full_spec((1, hid_p)),               # w4, b4
        full_spec((hid_p, out_p)), full_spec((1, out_p)),               # wo, bo
    ]
    out_spec = pl.BlockSpec((tile_n, out_p), lambda i: (i, 0))

    out_padded = pl.pallas_call(
        tbnn_kernel,
        out_shape=jax.ShapeDtypeStruct((n_p, out_p), jnp.float32),
        grid_spec=pl.GridSpec(
            grid=grid,
            in_specs=in_specs,
            out_specs=out_spec,
        ),
        compiler_params=pltpu.CompilerParams(
            dimension_semantics=("parallel",),
            vmem_limit_bytes=32 * 1024 * 1024,
        ),
    )(x_p, w1, b1, w2, b2, w3, b3, w4, b4, wo, bo)

    return out_padded[:N, :out_dim]


def init_params(key, input_dim, hidden_dim, out_dim=OUT_DIM):
    """Deterministic synthetic initialization (PyTorch-shape compatible)."""
    ks = jax.random.split(key, 10)

    def lin(kw, kb, fan_in, fan_out):
        bound = 1.0 / jnp.sqrt(fan_in)
        w = jax.random.uniform(kw, (fan_in, fan_out), jnp.float32, -bound, bound)
        b = jax.random.uniform(kb, (1, fan_out), jnp.float32, -bound, bound)
        return w, b

    w1, b1 = lin(ks[0], ks[1], input_dim, hidden_dim)
    w2, b2 = lin(ks[2], ks[3], hidden_dim, hidden_dim)
    w3, b3 = lin(ks[4], ks[5], hidden_dim, hidden_dim)
    w4, b4 = lin(ks[6], ks[7], hidden_dim, hidden_dim)
    wo, bo = lin(ks[8], ks[9], hidden_dim, out_dim)
    return dict(w1=w1, b1=b1, w2=w2, b2=b2, w3=w3, b3=b3,
                w4=w4, b4=b4, wo=wo, bo=bo)


def tbnn_ref(x, p):
    """Pure-JAX reference of the PyTorch forward (eval mode)."""
    h = x
    for wk, bk in (("w1", "b1"), ("w2", "b2"), ("w3", "b3"), ("w4", "b4")):
        h = h @ p[wk] + p[bk]
        h = jnp.where(h > 0, h, NEG_SLOPE * h)
    return h @ p["wo"] + p["bo"]


if __name__ == "__main__":
    key = jax.random.PRNGKey(0)
    k_x, k_p = jax.random.split(key)

    N, input_dim, hidden_dim = 64, 16, 32
    x = jax.random.normal(k_x, (N, input_dim), jnp.float32)
    params = init_params(k_p, input_dim, hidden_dim, OUT_DIM)
    ref = tbnn_ref(x, params)

    # Default (bf16 MXU inputs, f32 accumulation) path.
    out_bf16 = jax.block_until_ready(tbnn_forward(x, params))
    assert out_bf16.shape == (N, OUT_DIM)
    assert jnp.allclose(out_bf16, ref, atol=5e-2, rtol=5e-2), \
        "bf16-MXU path mismatch vs reference"

    # f32-MXU path (bit-parity with the f32 PyTorch model) on a batch size
    # that is NOT a multiple of the tile -> exercises the padded/ragged grid.
    x2 = x[:50]
    out_f32 = jax.block_until_ready(
        tbnn_forward(x2, params, mxu_dtype=jnp.float32))
    assert out_f32.shape == (50, OUT_DIM)
    assert jnp.allclose(out_f32, tbnn_ref(x2, params), atol=1e-4, rtol=1e-4), \
        "f32-MXU path mismatch vs reference"

    print("KERNEL_OK")
</pallas_src>

<mosaic_0001>
module attributes {stable_mosaic.version = 11 : i64} {
  func.func @tbnn_kernel(%arg0: i32, %arg1: memref<32x128xbf16, #tpu.memory_space<vmem>>, %arg2: memref<128x128xbf16, #tpu.memory_space<vmem>>, %arg3: memref<1x128xf32, #tpu.memory_space<vmem>>, %arg4: memref<128x128xbf16, #tpu.memory_space<vmem>>, %arg5: memref<1x128xf32, #tpu.memory_space<vmem>>, %arg6: memref<128x128xbf16, #tpu.memory_space<vmem>>, %arg7: memref<1x128xf32, #tpu.memory_space<vmem>>, %arg8: memref<128x128xbf16, #tpu.memory_space<vmem>>, %arg9: memref<1x128xf32, #tpu.memory_space<vmem>>, %arg10: memref<128x128xbf16, #tpu.memory_space<vmem>>, %arg11: memref<1x128xf32, #tpu.memory_space<vmem>>, %arg12: memref<32x128xf32, #tpu.memory_space<vmem>>) attributes {dimension_semantics = [#tpu.dimension_semantics<parallel>], iteration_bounds = array<i64: 2>, scalar_prefetch = 0 : i64, scratch_operands = 0 : i64, tpu.core_type = #tpu.core_type<tc>, window_params = [{transform_indices = @transform_0, window_bounds = array<i64: 32, 128>}, {pipeline_mode = #tpu.pipeline_mode<synchronous>, transform_indices = @transform_1, window_bounds = array<i64: 128, 128>}, {pipeline_mode = #tpu.pipeline_mode<synchronous>, transform_indices = @transform_2, window_bounds = array<i64: 1, 128>}, {pipeline_mode = #tpu.pipeline_mode<synchronous>, transform_indices = @transform_3, window_bounds = array<i64: 128, 128>}, {pipeline_mode = #tpu.pipeline_mode<synchronous>, transform_indices = @transform_4, window_bounds = array<i64: 1, 128>}, {pipeline_mode = #tpu.pipeline_mode<synchronous>, transform_indices = @transform_5, window_bounds = array<i64: 128, 128>}, {pipeline_mode = #tpu.pipeline_mode<synchronous>, transform_indices = @transform_6, window_bounds = array<i64: 1, 128>}, {pipeline_mode = #tpu.pipeline_mode<synchronous>, transform_indices = @transform_7, window_bounds = array<i64: 128, 128>}, {pipeline_mode = #tpu.pipeline_mode<synchronous>, transform_indices = @transform_8, window_bounds = array<i64: 1, 128>}, {pipeline_mode = #tpu.pipeline_mode<synchronous>, transform_indices = @transform_9, window_bounds = array<i64: 128, 128>}, {pipeline_mode = #tpu.pipeline_mode<synchronous>, transform_indices = @transform_10, window_bounds = array<i64: 1, 128>}, {transform_indices = @transform_11, window_bounds = array<i64: 32, 128>}]} {
    %c0 = arith.constant 0 : index
    %c0_0 = arith.constant 0 : index
    %0 = vector.load %arg3[%c0, %c0_0] : memref<1x128xf32, #tpu.memory_space<vmem>>, vector<1x128xf32>
    %c0_1 = arith.constant 0 : index
    %c0_2 = arith.constant 0 : index
    %1 = vector.load %arg5[%c0_1, %c0_2] : memref<1x128xf32, #tpu.memory_space<vmem>>, vector<1x128xf32>
    %c0_3 = arith.constant 0 : index
    %c0_4 = arith.constant 0 : index
    %2 = vector.load %arg7[%c0_3, %c0_4] : memref<1x128xf32, #tpu.memory_space<vmem>>, vector<1x128xf32>
    %c0_5 = arith.constant 0 : index
    %c0_6 = arith.constant 0 : index
    %3 = vector.load %arg9[%c0_5, %c0_6] : memref<1x128xf32, #tpu.memory_space<vmem>>, vector<1x128xf32>
    %c0_7 = arith.constant 0 : index
    %c0_8 = arith.constant 0 : index
    %4 = vector.load %arg11[%c0_7, %c0_8] : memref<1x128xf32, #tpu.memory_space<vmem>>, vector<1x128xf32>
    %c0_9 = arith.constant 0 : index
    %c0_10 = arith.constant 0 : index
    %5 = vector.load %arg1[%c0_9, %c0_10] : memref<32x128xbf16, #tpu.memory_space<vmem>>, vector<32x128xbf16>
    %c0_11 = arith.constant 0 : index
    %c0_12 = arith.constant 0 : index
    %6 = vector.load %arg2[%c0_11, %c0_12] : memref<128x128xbf16, #tpu.memory_space<vmem>>, vector<128x128xbf16>
    %cst = arith.constant dense<0.000000e+00> : vector<32x128xf32>
    %7 = tpu.matmul %5, %6, %cst {dimension_numbers = #tpu.dot_dimension_numbers<[1], [0], [0], [1], [0, 0, 1, 1], [], []>} : vector<32x128xbf16>, vector<128x128xbf16>, vector<32x128xf32> -> vector<32x128xf32>
    %8 = vector.broadcast %0 : vector<1x128xf32> to vector<32x128xf32>
    %9 = arith.addf %7, %8 : vector<32x128xf32>
    %cst_13 = arith.constant 0.000000e+00 : f32
    %10 = vector.broadcast %cst_13 : f32 to vector<32x128xf32>
    %11 = arith.cmpf ogt, %9, %10 : vector<32x128xf32>
    %cst_14 = arith.constant 0.00999999977 : f32
    %12 = vector.broadcast %cst_14 : f32 to vector<32x128xf32>
    %13 = arith.mulf %12, %9 : vector<32x128xf32>
    %14 = arith.select %11, %9, %13 : vector<32x128xi1>, vector<32x128xf32>
    %15 = arith.truncf %14 : vector<32x128xf32> to vector<32x128xbf16>
    %c0_15 = arith.constant 0 : index
    %c0_16 = arith.constant 0 : index
    %16 = vector.load %arg4[%c0_15, %c0_16] : memref<128x128xbf16, #tpu.memory_space<vmem>>, vector<128x128xbf16>
    %cst_17 = arith.constant dense<0.000000e+00> : vector<32x128xf32>
    %17 = tpu.matmul %15, %16, %cst_17 {dimension_numbers = #tpu.dot_dimension_numbers<[1], [0], [0], [1], [0, 0, 1, 1], [], []>} : vector<32x128xbf16>, vector<128x128xbf16>, vector<32x128xf32> -> vector<32x128xf32>
    %18 = vector.broadcast %1 : vector<1x128xf32> to vector<32x128xf32>
    %19 = arith.addf %17, %18 : vector<32x128xf32>
    %cst_18 = arith.constant 0.000000e+00 : f32
    %20 = vector.broadcast %cst_18 : f32 to vector<32x128xf32>
    %21 = arith.cmpf ogt, %19, %20 : vector<32x128xf32>
    %cst_19 = arith.constant 0.00999999977 : f32
    %22 = vector.broadcast %cst_19 : f32 to vector<32x128xf32>
    %23 = arith.mulf %22, %19 : vector<32x128xf32>
    %24 = arith.select %21, %19, %23 : vector<32x128xi1>, vector<32x128xf32>
    %25 = arith.truncf %24 : vector<32x128xf32> to vector<32x128xbf16>
    %c0_20 = arith.constant 0 : index
    %c0_21 = arith.constant 0 : index
    %26 = vector.load %arg6[%c0_20, %c0_21] : memref<128x128xbf16, #tpu.memory_space<vmem>>, vector<128x128xbf16>
    %cst_22 = arith.constant dense<0.000000e+00> : vector<32x128xf32>
    %27 = tpu.matmul %25, %26, %cst_22 {dimension_numbers = #tpu.dot_dimension_numbers<[1], [0], [0], [1], [0, 0, 1, 1], [], []>} : vector<32x128xbf16>, vector<128x128xbf16>, vector<32x128xf32> -> vector<32x128xf32>
    %28 = vector.broadcast %2 : vector<1x128xf32> to vector<32x128xf32>
    %29 = arith.addf %27, %28 : vector<32x128xf32>
    %cst_23 = arith.constant 0.000000e+00 : f32
    %30 = vector.broadcast %cst_23 : f32 to vector<32x128xf32>
    %31 = arith.cmpf ogt, %29, %30 : vector<32x128xf32>
    %cst_24 = arith.constant 0.00999999977 : f32
    %32 = vector.broadcast %cst_24 : f32 to vector<32x128xf32>
    %33 = arith.mulf %32, %29 : vector<32x128xf32>
    %34 = arith.select %31, %29, %33 : vector<32x128xi1>, vector<32x128xf32>
    %35 = arith.truncf %34 : vector<32x128xf32> to vector<32x128xbf16>
    %c0_25 = arith.constant 0 : index
    %c0_26 = arith.constant 0 : index
    %36 = vector.load %arg8[%c0_25, %c0_26] : memref<128x128xbf16, #tpu.memory_space<vmem>>, vector<128x128xbf16>
    %cst_27 = arith.constant dense<0.000000e+00> : vector<32x128xf32>
    %37 = tpu.matmul %35, %36, %cst_27 {dimension_numbers = #tpu.dot_dimension_numbers<[1], [0], [0], [1], [0, 0, 1, 1], [], []>} : vector<32x128xbf16>, vector<128x128xbf16>, vector<32x128xf32> -> vector<32x128xf32>
    %38 = vector.broadcast %3 : vector<1x128xf32> to vector<32x128xf32>
    %39 = arith.addf %37, %38 : vector<32x128xf32>
    %cst_28 = arith.constant 0.000000e+00 : f32
    %40 = vector.broadcast %cst_28 : f32 to vector<32x128xf32>
    %41 = arith.cmpf ogt, %39, %40 : vector<32x128xf32>
    %cst_29 = arith.constant 0.00999999977 : f32
    %42 = vector.broadcast %cst_29 : f32 to vector<32x128xf32>
    %43 = arith.mulf %42, %39 : vector<32x128xf32>
    %44 = arith.select %41, %39, %43 : vector<32x128xi1>, vector<32x128xf32>
    %45 = arith.truncf %44 : vector<32x128xf32> to vector<32x128xbf16>
    %c0_30 = arith.constant 0 : index
    %c0_31 = arith.constant 0 : index
    %46 = vector.load %arg10[%c0_30, %c0_31] : memref<128x128xbf16, #tpu.memory_space<vmem>>, vector<128x128xbf16>
    %cst_32 = arith.constant dense<0.000000e+00> : vector<32x128xf32>
    %47 = tpu.matmul %45, %46, %cst_32 {dimension_numbers = #tpu.dot_dimension_numbers<[1], [0], [0], [1], [0, 0, 1, 1], [], []>} : vector<32x128xbf16>, vector<128x128xbf16>, vector<32x128xf32> -> vector<32x128xf32>
    %48 = vector.broadcast %4 : vector<1x128xf32> to vector<32x128xf32>
    %49 = arith.addf %47, %48 : vector<32x128xf32>
    %c0_33 = arith.constant 0 : index
    %c0_34 = arith.constant 0 : index
    %50 = vector.load %arg12[%c0_33, %c0_34] : memref<32x128xf32, #tpu.memory_space<vmem>>, vector<32x128xf32>
    tpu.vector_store %arg12[%c0_33, %c0_34], %49 {strides = array<i32>} : memref<32x128xf32, #tpu.memory_space<vmem>>, vector<32x128xf32>,
    return
  }
  func.func @transform_0(%arg0: i32) -> (i32, i32) {
    %c0_i32 = arith.constant 0 : i32
    %c0_i32_0 = arith.constant 0 : i32
    return %arg0, %c0_i32 : i32, i32
  }
  func.func @transform_1(%arg0: i32) -> (i32, i32) {
    %c0_i32 = arith.constant 0 : i32
    %c0_i32_0 = arith.constant 0 : i32
    %c0_i32_1 = arith.constant 0 : i32
    return %c0_i32, %c0_i32_0 : i32, i32
  }
  func.func @transform_2(%arg0: i32) -> (i32, i32) {
    %c0_i32 = arith.constant 0 : i32
    %c0_i32_0 = arith.constant 0 : i32
    %c0_i32_1 = arith.constant 0 : i32
    return %c0_i32, %c0_i32_0 : i32, i32
  }
  func.func @transform_3(%arg0: i32) -> (i32, i32) {
    %c0_i32 = arith.constant 0 : i32
    %c0_i32_0 = arith.constant 0 : i32
    %c0_i32_1 = arith.constant 0 : i32
    return %c0_i32, %c0_i32_0 : i32, i32
  }
  func.func @transform_4(%arg0: i32) -> (i32, i32) {
    %c0_i32 = arith.constant 0 : i32
    %c0_i32_0 = arith.constant 0 : i32
    %c0_i32_1 = arith.constant 0 : i32
    return %c0_i32, %c0_i32_0 : i32, i32
  }
  func.func @transform_5(%arg0: i32) -> (i32, i32) {
    %c0_i32 = arith.constant 0 : i32
    %c0_i32_0 = arith.constant 0 : i32
    %c0_i32_1 = arith.constant 0 : i32
    return %c0_i32, %c0_i32_0 : i32, i32
  }
  func.func @transform_6(%arg0: i32) -> (i32, i32) {
    %c0_i32 = arith.constant 0 : i32
    %c0_i32_0 = arith.constant 0 : i32
    %c0_i32_1 = arith.constant 0 : i32
    return %c0_i32, %c0_i32_0 : i32, i32
  }
  func.func @transform_7(%arg0: i32) -> (i32, i32) {
    %c0_i32 = arith.constant 0 : i32
    %c0_i32_0 = arith.constant 0 : i32
    %c0_i32_1 = arith.constant 0 : i32
    return %c0_i32, %c0_i32_0 : i32, i32
  }
  func.func @transform_8(%arg0: i32) -> (i32, i32) {
    %c0_i32 = arith.constant 0 : i32
    %c0_i32_0 = arith.constant 0 : i32
    %c0_i32_1 = arith.constant 0 : i32
    return %c0_i32, %c0_i32_0 : i32, i32
  }
  func.func @transform_9(%arg0: i32) -> (i32, i32) {
    %c0_i32 = arith.constant 0 : i32
    %c0_i32_0 = arith.constant 0 : i32
    %c0_i32_1 = arith.constant 0 : i32
    return %c0_i32, %c0_i32_0 : i32, i32
  }
  func.func @transform_10(%arg0: i32) -> (i32, i32) {
    %c0_i32 = arith.constant 0 : i32
    %c0_i32_0 = arith.constant 0 : i32
    %c0_i32_1 = arith.constant 0 : i32
    return %c0_i32, %c0_i32_0 : i32, i32
  }
  func.func @transform_11(%arg0: i32) -> (i32, i32) {
    %c0_i32 = arith.constant 0 : i32
    %c0_i32_0 = arith.constant 0 : i32
    return %arg0, %c0_i32 : i32, i32
  }
}

</mosaic_0001>

<bundles_post_ra>
// kernel: tpu_custom_call.1
= control target key start
LH: loop header
LB: loop body
LE: loop exit
PB: predicated region body
PF: predicated region fallthrough
CT: control target
= control target key end

     0   :  { %s2318_s0 = inlined_call_operand.hbm [shape: bf16[64,128], index: 0, kind: input, shape index: {}]   ;;  %s2319_s1 = inlined_call_operand.hbm [shape: bf16[128,128], index: 1, kind: input, shape index: {}]   ;;  %s2320_s2 = inlined_call_operand.vmem [shape: f32[1,128], index: 2, kind: input, shape index: {}]   ;;  %s2321_s3 = inlined_call_operand.hbm [shape: bf16[128,128], index: 3, kind: input, shape index: {}]   ;;  %s2322_s4 = inlined_call_operand.vmem [shape: f32[1,128], index: 4, kind: input, shape index: {}]   ;;  %s2323_s5 = inlined_call_operand.hbm [shape: bf16[128,128], index: 5, kind: input, shape index: {}]   ;;  %s2324_s6 = inlined_call_operand.vmem [shape: f32[1,128], index: 6, kind: input, shape index: {}]   ;;  %s2325_s7 = inlined_call_operand.hbm [shape: bf16[128,128], index: 7, kind: input, shape index: {}]   ;;  %s2326_s8 = inlined_call_operand.vmem [shape: f32[1,128], index: 8, kind: input, shape index: {}]   ;;  %s2327_s9 = inlined_call_operand.hbm [shape: bf16[128,128], index: 9, kind: input, shape index: {}]   ;;  %s2328_s10 = inlined_call_operand.vmem [shape: f32[1,128], index: 10, kind: input, shape index: {}]   ;;  %s2329_s11 = inlined_call_operand.hbm [shape: f32[64,128], index: 11, kind: output, shape index: {}]  }
   0x1   :  { %2335 = sst [smem:[#allocation19_spill]] %s2319_s1 }
   0x2   :  { %2336 = sst [smem:[#allocation20_spill]] %s2326_s8 }
   0x3   :  { %2337 = sst [smem:[#allocation21_spill]] %s2328_s10 }
   0x4   :  { %2338 = sst [smem:[#allocation22_spill]] %s2329_s11 }
   0x5   :  { %16 = vsyncpa [#allocation3], 0 }
   0x6   :  { %18 = vsyncpa [#allocation3 + $0x1], 0 }
   0x7   :  { %19 = vsyncpa [#allocation6], 0 }
   0x8   :  { %20 = vsyncpa [#allocation9], 0 }
   0x9   :  { %21 = vsyncpa [#allocation12], 0 }
   0xa   :  { %22 = vsyncpa [#allocation4], 0 }
   0xb   :  { %24 = vsyncpa [#allocation4 + $0x1], 0  ;;  %s1979_s17 = smov 0   ;;  %s1981_s18 = smov 0  }
   0xc   :  { %s1983_s19 = smov 0   ;;  %s1985_s20 = smov 0  }
   0xd LB: > { %s1908_s21 = smov [#allocation5]   ;;  %s2000_s23 = sadd.s32 4294967295, %s1906_s20   ;;  %s1906_s20 = sphi %s1985_s20, %s2365_s20   ;;  %s1902_s19 = sphi %s1983_s19, %s2364_s19   ;;  %s1898_s18 = sphi %s1981_s18, %s2363_s18   ;;  %s1894_s17 = sphi %s1979_s17, %s2362_s17  }
   0xe   : > { %s309_s22 = sshll.u32 %s1908_s21, 4  ;;  %p1293_p0 = scmp.ge.s32.totalorder %s1906_s20, 1  ;;  %s2005_s22 = int_to_ptr.vmem [resolvable:$true] %s309_s22 }
   0xf   : > { %p2331_p1 = scmp.eq.s32.totalorder %s2000_s23, 0  ;;  %p297_p2 = scmp.lt.s32.totalorder %s1906_s20, 3 }
  0x10   : > { %s1909_s25 = smov [#allocation8]   ;;  %s1910_s28 = smov [#allocation7]  }
  0x11   : > { %p2007_p3 = pnand %p1293_p0, %p297_p2  ;;  %s341_s26 = sshll.u32 %s1909_s25, 4  ;;  %s2020_s26 = int_to_ptr.vmem [resolvable:$true] %s341_s26 }
  0x12   : > { %s325_s29 = sshll.u32 %s1910_s28, 4  ;;  %s2341_s1 = sld [smem:[#allocation19_spill]]  ;;  %s2022_s29 = int_to_ptr.vmem [resolvable:$true] %s325_s29 }
  0x13   : > { %s2339_s24 = scalar_select %p2007_p3, 1, 0 }
  0x14   : > { %p1539_p5 = pneg %p2007_p3 }
  0x16   : > { %p2016_p6 = pnand %p1539_p5, %p2331_p1 }
  0x18   : > { %s1658_s13 = scalar_lea.hbm %s2341_s1, 1024  ;;  %p2032_p8 = pneg %p2016_p6 }
  0x19   : > { %p1659_p7 = scmp.ne.s32.totalorder %s2341_s1, %s1658_s13  ;;  %p1665_p11 = scmp.lt.u32.totalorder %s1658_s13, %s2341_s1 }
  0x1b   : > { %p1661_p9 = pnand %p2032_p8, %p1659_p7 }
  0x1d   : > { %p1662_p10 = pneg %p1661_p9 }
  0x1f   : > { %p1667_p12 = pnand %p1665_p11, %p1662_p10 }
  0x21   : > { %1670 = shalt.err (!%p1667_p12)
}
  0x22   : > { %s1671_s28 = scalar_lea.vmem %s2005_s22, 1024  ;;  %p1679_p5 = scmp.lt.s32.totalorder %s2005_s22, %s2005_s22 }
  0x23   : > { %p1672_p13 = scmp.ne.s32.totalorder %s2005_s22, %s1671_s28  ;;  %p1680_p4 = scmp.lt.s32.totalorder %s1671_s28, %s1671_s28 }
  0x25   : > { %p1674_p0 = pnand %p1672_p13, %p2032_p8  ;;  %p1681_p7 = por %p1680_p4, %p1679_p5 }
  0x27   : > { %p1675_p2 = pneg %p1674_p0 }
  0x29   : > { %p1682_p9 = pnand %p1681_p7, %p1675_p2 }
  0x2b   : > { %1685 = shalt.err (!%p1682_p9)
}
  0x2c   : > { %s2333_s30 = smov 64   ;;  %s1912_s12 = smov 4  }
  0x2d   : > { %1542 = dma.hbm_to_vmem [thread:$0]  (!%p2016_p6), %s2341_s1, 1024, %s2005_s22, [#allocation6], %s2333_s30, %s2333_s30, %s1912_s12  }
  0x2e   : > { %s1686_s25 = scalar_lea.hbm %s2323_s5, 1024 }
  0x2f   : > { %p1687_p4 = scmp.ne.s32.totalorder %s2323_s5, %s1686_s25  ;;  %p1693_p12 = scmp.lt.u32.totalorder %s1686_s25, %s2323_s5 }
  0x31   : > { %p1689_p10 = pnand %p1687_p4, %p2032_p8 }
  0x33   : > { %p1690_p11 = pneg %p1689_p10 }
  0x35   : > { %p1695_p13 = pnand %p1693_p12, %p1690_p11 }
  0x37   : > { %1698 = shalt.err (!%p1695_p13)
}
  0x38   : > { %s1699_s22 = scalar_lea.vmem %s2020_s26, 1024  ;;  %p1707_p7 = scmp.lt.s32.totalorder %s2020_s26, %s2020_s26 }
  0x39   : > { %p1700_p0 = scmp.ne.s32.totalorder %s2020_s26, %s1699_s22  ;;  %p1708_p9 = scmp.lt.s32.totalorder %s1699_s22, %s1699_s22 }
  0x3b   : > { %p1702_p2 = pnand %p1700_p0, %p2032_p8  ;;  %p1709_p4 = por %p1708_p9, %p1707_p7 }
  0x3d   : > { %p1703_p5 = pneg %p1702_p2 }
  0x3f   : > { %p1710_p10 = pnand %p1709_p4, %p1703_p5 }
  0x41   : > { %1713 = shalt.err (!%p1710_p10)
}
  0x42   : > { %1548 = dma.hbm_to_vmem [thread:$0]  (!%p2016_p6), %s2323_s5, 1024, %s2020_s26, [#allocation9], %s2333_s30, %s2333_s30, %s1912_s12  }
  0x43   : > { %s1714_s14 = scalar_lea.hbm %s2321_s3, 1024 }
  0x44   : > { %p1715_p11 = scmp.ne.s32.totalorder %s2321_s3, %s1714_s14  ;;  %p1721_p0 = scmp.lt.u32.totalorder %s1714_s14, %s2321_s3 }
  0x46   : > { %p1717_p12 = pnand %p1715_p11, %p2032_p8 }
  0x48   : > { %p1718_p13 = pneg %p1717_p12 }
  0x4a   : > { %p1723_p2 = pnand %p1721_p0, %p1718_p13 }
  0x4c   : > { %1726 = shalt.err (!%p1723_p2)
}
  0x4d   : > { %s1727_s26 = scalar_lea.vmem %s2022_s29, 1024  ;;  %p1735_p4 = scmp.lt.s32.totalorder %s2022_s29, %s2022_s29 }
  0x4e   : > { %p1728_p5 = scmp.ne.s32.totalorder %s2022_s29, %s1727_s26  ;;  %p1736_p10 = scmp.lt.s32.totalorder %s1727_s26, %s1727_s26 }
  0x50   : > { %p1730_p7 = pnand %p1728_p5, %p2032_p8  ;;  %p1737_p11 = por %p1736_p10, %p1735_p4 }
  0x52   : > { %p1731_p9 = pneg %p1730_p7 }
  0x54   : > { %p1738_p12 = pnand %p1737_p11, %p1731_p9 }
  0x56   : > { %1741 = shalt.err (!%p1738_p12)
}
  0x57   : > { %1545 = dma.hbm_to_vmem [thread:$0]  (!%p2016_p6), %s2321_s3, 1024, %s2022_s29, [#allocation6], %s2333_s30, %s2333_s30, %s1912_s12  }
  0x58   : > { %s1913_s10 = smov [#allocation10]   ;;  %s1914_s13 = smov [#allocation11]  }
  0x59   : > { %s357_s11 = sshll.u32 %s1913_s10, 4  ;;  %s373_s14 = sshll.u32 %s1914_s13, 4  ;;  %s358_s11 = int_to_ptr.vmem [resolvable:$true] %s357_s11  ;;  %s374_s14 = int_to_ptr.vmem [resolvable:$true] %s373_s14 }
  0x5a   : > { %s1742_s25 = scalar_lea.hbm %s2325_s7, 1024 }
  0x5b   : > { %p1743_p13 = scmp.ne.s32.totalorder %s2325_s7, %s1742_s25  ;;  %p1749_p5 = scmp.lt.u32.totalorder %s1742_s25, %s2325_s7 }
  0x5d   : > { %p1745_p0 = pnand %p1743_p13, %p2032_p8 }
  0x5f   : > { %p1746_p2 = pneg %p1745_p0 }
  0x61   : > { %p1751_p7 = pnand %p1749_p5, %p1746_p2 }
  0x63   : > { %1754 = shalt.err (!%p1751_p7)
}
  0x64   : > { %s1755_s29 = scalar_lea.vmem %s358_s11, 1024  ;;  %p1763_p11 = scmp.lt.s32.totalorder %s358_s11, %s358_s11 }
  0x65   : > { %p1756_p9 = scmp.ne.s32.totalorder %s358_s11, %s1755_s29  ;;  %p1764_p12 = scmp.lt.s32.totalorder %s1755_s29, %s1755_s29 }
  0x67   : > { %p1758_p4 = pnand %p1756_p9, %p2032_p8  ;;  %p1765_p1 = por %p1764_p12, %p1763_p11 }
  0x69   : > { %p1759_p10 = pneg %p1758_p4 }
  0x6b   : > { %p1766_p3 = pnand %p1765_p1, %p1759_p10 }
  0x6d   : > { %1769 = shalt.err (!%p1766_p3)
}
  0x6e   : > { %1551 = dma.hbm_to_vmem [thread:$0]  (!%p2016_p6), %s2325_s7, 1024, %s358_s11, [#allocation9], %s2333_s30, %s2333_s30, %s1912_s12  }
  0x6f   : > { %s1770_s15 = scalar_lea.hbm %s2327_s9, 1024 }
  0x70   : > { %p1771_p1 = scmp.ne.s32.totalorder %s2327_s9, %s1770_s15  ;;  %p1777_p0 = scmp.lt.u32.totalorder %s1770_s15, %s2327_s9 }
  0x72   : > { %p1773_p3 = pnand %p1771_p1, %p2032_p8 }
  0x74   : > { %p1774_p13 = pneg %p1773_p3 }
  0x76   : > { %p1779_p2 = pnand %p1777_p0, %p1774_p13 }
  0x78   : > { %1782 = shalt.err (!%p1779_p2)
}
  0x79   : > { %s1783_s22 = scalar_lea.vmem %s374_s14, 1024  ;;  %p1791_p4 = scmp.lt.s32.totalorder %s374_s14, %s374_s14 }
  0x7a   : > { %p1784_p5 = scmp.ne.s32.totalorder %s374_s14, %s1783_s22  ;;  %p1792_p10 = scmp.lt.s32.totalorder %s1783_s22, %s1783_s22 }
  0x7c   : > { %p1786_p7 = pnand %p1784_p5, %p2032_p8  ;;  %p1793_p11 = por %p1792_p10, %p1791_p4 }
  0x7e   : > { %p1787_p9 = pneg %p1786_p7 }
  0x80   : > { %p1794_p12 = pnand %p1793_p11, %p1787_p9 }
  0x82   : > { %1797 = shalt.err (!%p1794_p12)
}
  0x83   : > { %1554 = dma.hbm_to_vmem [thread:$0]  (!%p2016_p6), %s2327_s9, 1024, %s374_s14, [#allocation12], %s2333_s30, %s2333_s30, %s1912_s12  }
  0x84   : > { %s1292_s27 = sadd.s32 4294967294, %s1906_s20   ;;  %s2152_s16 = sadd.s32 1, %s1906_s20  }
  0x85   : > { %s37_s1 = sadd.s32 1, %s1902_s19  ;;  %s34_s8 = ssub.s32 %s1906_s20, %s2152_s16 }
  0x86   : > { %p44_p8 = scmp.ne.s32.totalorder %s1902_s19, %s1898_s18  ;;  %p35_p1 = scmp.eq.s32.totalorder %s34_s8, 0 }
  0x87   : > { %p45_p3 = scmp.eq.s32.totalorder %s1906_s20, 0  ;;  %p50_p13 = scmp.ne.s32.totalorder %s1898_s18, %s1894_s17 }
  0x88   : > { %p284_p0 = scmp.eq.s32.totalorder %s2000_s23, 1  ;;  %p2343_p5 = scmp.eq.s32.totalorder %s2000_s23, 0 }
  0x89   : > { %s2164_s10 = scalar_select %p35_p1, %s1902_s19, %s37_s1  }
  0x8a   : > { %p46_p2 = por %p45_p3, %p44_p8  ;;  %p2168_p7 = por %p2343_p5, %p50_p13 }
  0x8b   : > { %p2172_p6 = por %p284_p0, %p44_p8  ;;  %p290_p9 = scmp.eq.s32.totalorder %s1292_s27, 1 }
  0x8c   : > { %p1568_p4 = scmp.lt.s32.totalorder %s1906_s20, 2  ;;  %s390_s15 = sand.u32 1, %s1902_s19  }
  0x8d   : > { %s2345_s14 = scalar_select %p2172_p6, 1, 0 }
  0x8e   : > { %p2178_p10 = por %p290_p9, %p50_p13  ;;  %s1300_s25 = sshll.u32 %s390_s15, 4 }
  0x8f   : > { %s1363_s28 = sshll.u32 %s1906_s20, 8  ;;  %s394_s29 = scalar_lea.vmem [#allocation2], %s1300_s25 }
  0x90   : > { %s2346_s21 = scalar_select %p2178_p10, 1, 0 }
  0x91   : > { %s2186_s11 = scalar_lea.hbm %s2318_s0, %s1363_s28  ;;  %s401_s1 = sshll.u32 %s394_s29, 4  ;;  %s2192_s1 = int_to_ptr.vmem [resolvable:$true] %s401_s1 }
  0x92   : > { %p2188_p11 = pnand %p1568_p4, %p46_p2  ;;  %s2194_s8 = scalar_lea.sflag [#allocation3], %s390_s15 }
  0x93   : > { %s1798_s30 = scalar_lea.hbm %s2186_s11, 256  ;;  %s1803_s26 = scalar_lea.hbm %s2318_s0, 512 }
  0x94   : > { %p1799_p12 = scmp.ne.s32.totalorder %s2186_s11, %s1798_s30  ;;  %p1800_p8 = pneg %p2188_p11 }
  0x95   : > { %p1804_p13 = scmp.lt.u32.totalorder %s2186_s11, %s2318_s0  ;;  %p1805_p0 = scmp.lt.u32.totalorder %s1803_s26, %s1798_s30 }
  0x96   : > { %p1801_p1 = pnand %p1800_p8, %p1799_p12  ;;  %p1807_p5 = scmp.lt.u32.totalorder %s1798_s30, %s2186_s11 }
  0x97   : > { %p1806_p2 = por %p1805_p0, %p1804_p13 }
  0x98   : > { %p1802_p3 = pneg %p1801_p1 }
  0x99   : > { %p1808_p9 = por %p1807_p5, %p1806_p2 }
  0x9b   : > { %p1809_p4 = pnand %p1808_p9, %p1802_p3 }
  0x9d   : > { %1812 = shalt.err (!%p1809_p4)
}
  0x9e   : > { %s1813_s15 = scalar_lea.vmem %s2192_s1, 256  ;;  %s1915_s25 = smov [#allocation2]  }
  0x9f   : > { %p1814_p12 = scmp.ne.s32.totalorder %s2192_s1, %s1813_s15  ;;  %s1818_s28 = sshll.u32 %s1915_s25, 4  ;;  %s1819_s28 = int_to_ptr.vmem [resolvable:$false] %s1818_s28 }
  0xa0   : > { %s1820_s22 = scalar_lea.vmem %s1819_s28, 512  ;;  %p1821_p6 = scmp.lt.s32.totalorder %s2192_s1, %s1819_s28 }
  0xa1   : > { %p1816_p1 = pnand %p1814_p12, %p1800_p8  ;;  %p1822_p13 = scmp.lt.s32.totalorder %s1820_s22, %s1813_s15 }
  0xa3   : > { %p1817_p10 = pneg %p1816_p1  ;;  %p1823_p0 = por %p1822_p13, %p1821_p6 }
  0xa5   : > { %p1824_p2 = pnand %p1823_p0, %p1817_p10 }
  0xa7   : > { %1827 = shalt.err (!%p1824_p2)
}
  0xa8   : > { %s2348_s30 = smov 64   ;;  %p2349_p8 = scmp.ne.s32.totalorder %s2339_s24, 0 }
  0xa9   : > { %1558 = dma.hbm_to_vmem [thread:$0]  (!%p2188_p11), %s2186_s11, 256, %s2192_s1, %s2194_s8, %s2348_s30, %s2348_s30, %s1912_s12  }
  0xaa   : > { %413 = sbr.rel (%p2349_p8) target bundleno = 1345 (0x541), region = 64  ;;  %s2228_s26 = sand.u32 (!%p2349_p8), 1, %s1898_s18  }
  0xab   : > { %s1304_s29 = sshll.u32 (!%p2349_p8), %s2228_s26, 4  ;;  %s416_s15 = scalar_lea.sflag (!%p2349_p8), [#allocation3], %s2228_s26 }
  0xac   : > { %s2232_s25 = scalar_lea.vmem (!%p2349_p8), [#allocation2], %s1304_s29 }
  0xb1   : > { %1873 = dma.done.wait (%p2168_p7), %s416_s15, 256  }
  0xb2   : > { %1875 = vsyncadd (%p2168_p7), %s416_s15, 4294967040  ;;  %p2350_p6 = scmp.eq.s32.totalorder %s2000_s23, 0 }
  0xb4   : > { %1877 = dma.done.wait (%p2350_p6), [#allocation6], 2048   ;;  %p2351_p10 = pmov %p2350_p6 }
  0xb5   : > { %p2352_p11 = pmov %p2350_p6 }
  0xb6   : > { %1879 = vsyncadd (%p2351_p10), [#allocation6], 4294965248 }
  0xb7   : > { %1881 = dma.done.wait (%p2352_p11), [#allocation9], 2048   ;;  %p2353_p3 = pmov %p2350_p6 }
  0xb9   : > { %1883 = vsyncadd (%p2353_p3), [#allocation9], 4294965248  ;;  %p2354_p5 = pmov %p2353_p3 }
  0xba   : > { %p2355_p9 = pmov %p2353_p3 }
  0xbb   : > { %1885 = dma.done.wait (%p2354_p5), [#allocation12], 1024  }
  0xbc   : > { %1887 = vsyncadd (%p2355_p9), [#allocation12], 4294966272  ;;  %v1616_v0 = vld [vmem:[#allocation5] sm:$0xff]   ;;  %v1617_v1 = vld [vmem:[#allocation5 + $0x8] sm:$0xff]   ;;  %s2356_s22 = sld [smem:[#allocation20_spill]]  ;;  %s1310_s30 = sshll.u32 %s2228_s26, 5 }
  0xbd   : > { %1415 = vmatprep.subr.bf16.mxu0 %v1616_v0  ;;  %v1618_v2 = vld [vmem:[#allocation5 + $0x10] sm:$0xff]   ;;  %v1619_v3 = vld [vmem:[#allocation5 + $0x18] sm:$0xff]   ;;  %v1626_v5 = vld [vmem:[#allocation7] sm:$0xff]   ;;  %s477_s24 = scalar_lea.vmem [#allocation13], %s1310_s30  ;;  %s1364_s13 = sshll.u32 %s2000_s23, 9 }
  0xbe   : > { %1416 = vmatpush3.bf16.msra.mxu0 %v1616_v0  ;;  %v1624_v4 = vld [vmem:[%s2232_s25] sm:$0xff]   ;;  %v1627_v6 = vld [vmem:[#allocation7 + $0x8] sm:$0xff]   ;;  %1435 = vmatprep.subr.bf16.mxu1 %v1626_v5  ;;  %v1629_v10 = vld [vmem:[#allocation7 + $0x18] sm:$0xff]   ;;  %s1171_s12 = sshll.u32 %s477_s24, 4  ;;  %s2358_s27 = sld [smem:[#allocation22_spill]]  ;;  %s2269_s12 = int_to_ptr.vmem [resolvable:$true] %s1171_s12 }
  0xbf   : > { %1417 = vmatprep.subr.bf16.mxu0 %v1617_v1  ;;  %1431 = vmatprep.mubr.bf16.mxu0 %v1624_v4  ;;  %v1620_v7 = vld [vmem:[#allocation5 + $0x20] sm:$0xff]   ;;  %v1621_v8 = vld [vmem:[#allocation5 + $0x28] sm:$0xff]   ;;  %v1628_v9 = vld [vmem:[#allocation7 + $0x10] sm:$0xff]   ;;  %s1158_s23 = scalar_lea.sflag [#allocation4], %s2228_s26  ;;  %s1828_s28 = scalar_lea.vmem %s2269_s12, 512 }
  0xc0   : > { %1436 = vmatpush3.bf16.msra.mxu1 %v1626_v5  ;;  %v1622_v11 = vld [vmem:[#allocation5 + $0x30] sm:$0xff]   ;;  %v1630_v12 = vld [vmem:[#allocation7 + $0x20] sm:$0xff]   ;;  %v1623_v13 = vld [vmem:[#allocation5 + $0x38] sm:$0xff]   ;;  %p1829_p7 = scmp.ne.s32.totalorder %s2269_s12, %s1828_s28  ;;  %p2359_p4 = scmp.ne.s32.totalorder %s2345_s14, 0 }
  0xc1   : > { %1437 = vmatprep.subr.bf16.mxu1 %v1627_v6  ;;  %v1625_v14 = vld [vmem:[%s2232_s25 + $0x8] sm:$0xff]   ;;  %v1632_v16 = vld [vmem:[#allocation7 + $0x30] sm:$0xff]   ;;  %v1634_v18 = vld [vmem:[#allocation8] sm:$0xff]   ;;  %s2357_s25 = sld [smem:[#allocation21_spill]] }
  0xc2   : > { %1418 = vmatpush3.bf16.msra.mxu0 %v1617_v1  ;;  %v1631_v15 = vld [vmem:[#allocation7 + $0x28] sm:$0xff]   ;;  %v1633_v17 = vld [vmem:[#allocation7 + $0x38] sm:$0xff]   ;;  %v1636_v20 = vld [vmem:[#allocation8 + $0x10] sm:$0xff]   ;;  %p1830_p12 = pnand %p1829_p7, %p2359_p4 }
  0xc3   : > { %1419 = vmatprep.subr.bf16.mxu0 %v1618_v2  ;;  %v1635_v19 = vld [vmem:[#allocation8 + $0x8] sm:$0xff]   ;;  %v1637_v21 = vld [vmem:[#allocation8 + $0x18] sm:$0xff]   ;;  %v1638_v22 = vld [vmem:[#allocation8 + $0x20] sm:$0xff]  }
  0xc4   : > { %1438 = vmatpush3.bf16.msra.mxu1 %v1627_v6  ;;  %v1311_v23 = vld [vmem:[%s2320_s2] ss:$0 sm:$0xff]  ;;  %v1639_v42 = vld [vmem:[#allocation8 + $0x28] sm:$0xff]   ;;  %v1640_v43 = vld [vmem:[#allocation8 + $0x30] sm:$0xff]   ;;  %s2274_s8 = scalar_lea.hbm %s2358_s27, %s1364_s13  ;;  %p1831_p1 = pneg %p1830_p12 }
  0xc5   : > { %1439 = vmatprep.subr.bf16.mxu1 %v1628_v9  ;;  %v1641_v44 = vld [vmem:[#allocation8 + $0x38] sm:$0xff]   ;;  %v1642_v45 = vld [vmem:[#allocation10] sm:$0xff]   ;;  %v1643_v46 = vld [vmem:[#allocation10 + $0x8] sm:$0xff]  }
  0xc6   : > { %1420 = vmatpush3.bf16.msra.mxu0 %v1618_v2  ;;  %v1644_v47 = vld [vmem:[#allocation10 + $0x10] sm:$0xff]   ;;  %v1645_v48 = vld [vmem:[#allocation10 + $0x18] sm:$0xff]   ;;  %v1646_v49 = vld [vmem:[#allocation10 + $0x20] sm:$0xff]  }
  0xc7   : > { %1421 = vmatprep.subr.bf16.mxu0 %v1619_v3  ;;  %v1322_v50 = vld [vmem:[%s2322_s4] ss:$0 sm:$0xff]  ;;  %v1647_v5 = vld [vmem:[#allocation10 + $0x28] sm:$0xff]   ;;  %v1648_v6 = vld [vmem:[#allocation10 + $0x30] sm:$0xff]  }
  0xc8   : > { %1440 = vmatpush3.bf16.msra.mxu1 %v1628_v9  ;;  %v1651_v9 = vld [vmem:[#allocation11 + $0x8] sm:$0xff]  }
  0xc9   : > { %1441 = vmatprep.subr.bf16.mxu1 %v1629_v10 }
  0xca   : > { %1422 = vmatpush3.bf16.msra.mxu0 %v1619_v3 }
  0xcb   : > { %1423 = vmatprep.subr.bf16.mxu0 %v1620_v7 }
  0xcc   : > { %1442 = vmatpush3.bf16.msra.mxu1 %v1629_v10  ;;  %v1652_v10 = vld [vmem:[#allocation11 + $0x10] sm:$0xff]  }
  0xcd   : > { %1443 = vmatprep.subr.bf16.mxu1 %v1630_v12 }
  0xce   : > { %1424 = vmatpush3.bf16.msra.mxu0 %v1620_v7  ;;  %v1649_v7 = vld [vmem:[#allocation10 + $0x38] sm:$0xff]  }
  0xcf   : > { %1425 = vmatprep.subr.bf16.mxu0 %v1621_v8 }
  0xd0   : > { %1444 = vmatpush3.bf16.msra.mxu1 %v1630_v12  ;;  %v1654_v12 = vld [vmem:[#allocation11 + $0x20] sm:$0xff]  }
  0xd1   : > { %1445 = vmatprep.subr.bf16.mxu1 %v1631_v15 }
  0xd2   : > { %1426 = vmatpush3.bf16.msra.mxu0 %v1621_v8  ;;  %v1650_v8 = vld [vmem:[#allocation11] sm:$0xff]  }
  0xd3   : > { %1427 = vmatprep.subr.bf16.mxu0 %v1622_v11 }
  0xd4   : > { %1446 = vmatpush3.bf16.msra.mxu1 %v1631_v15 }
  0xd5   : > { %1447 = vmatprep.subr.bf16.mxu1 %v1632_v16 }
  0xd6   : > { %1428 = vmatpush3.bf16.msra.mxu0 %v1622_v11  ;;  %v1653_v11 = vld [vmem:[#allocation11 + $0x18] sm:$0xff]  }
  0xd7   : > { %1429 = vmatprep.subr.bf16.mxu0 %v1623_v13 }
  0xd8   : > { %1448 = vmatpush3.bf16.msra.mxu1 %v1632_v16 }
  0xd9   : > { %1449 = vmatprep.subr.bf16.mxu1 %v1633_v17 }
  0xda   : > { %1430 = vmatpush3.bf16.msra.mxu0 %v1623_v13  ;;  %v1331_v13 = vld [vmem:[%s2324_s6] ss:$0 sm:$0xff] }
  0xdb   : > { %1455 = vmatprep.subr.bf16.mxu0 %v1634_v18 }
  0xdc   : > { %1450 = vmatpush3.bf16.msra.mxu1 %v1633_v17 }
  0xdd   : > { %1432 = vmatmul.mubr.bf16.vlgmr.msra.gmra.mrb[0].mxu0 %v1625_v14  ;;  %1475 = vmatprep.subr.bf16.mxu1 %v1642_v45 }
  0xde   : > { %1456 = vmatpush3.bf16.msra.mxu0 %v1634_v18 }
  0xdf   : > { %1457 = vmatprep.subr.bf16.mxu0 %v1635_v19 }
  0xe2   : > { %1458 = vmatpush3.bf16.msra.mxu0 %v1635_v19 }
  0xe3   : > { %1459 = vmatprep.subr.bf16.mxu0 %v1636_v20 }
  0xe6   : > { %1460 = vmatpush3.bf16.msra.mxu0 %v1636_v20 }
  0xe7   : > { %1461 = vmatprep.subr.bf16.mxu0 %v1637_v21 }
  0xea   : > { %1462 = vmatpush3.bf16.msra.mxu0 %v1637_v21 }
  0xeb   : > { %1463 = vmatprep.subr.bf16.mxu0 %v1638_v22 }
  0xee   : > { %1464 = vmatpush3.bf16.msra.mxu0 %v1638_v22 }
  0xef   : > { %1465 = vmatprep.subr.bf16.mxu0 %v1639_v42 }
  0xf2   : > { %1466 = vmatpush3.bf16.msra.mxu0 %v1639_v42 }
  0xf3   : > { %1467 = vmatprep.subr.bf16.mxu0 %v1640_v43 }
  0xf6   : > { %1468 = vmatpush3.bf16.msra.mxu0 %v1640_v43 }
  0xf7   : > { %1469 = vmatprep.subr.bf16.mxu0 %v1641_v44 }
  0xfa   : > { %1470 = vmatpush3.bf16.msra.mxu0 %v1641_v44 }
  0xfb   : > { %1495 = vmatprep.subr.bf16.mxu0 %v1650_v8 }
 0x1b0   : > { %v1433_v24 = vpop.f32.mrb[0].mxu0 }
 0x1b1   : > { %v615_v25 = vadd.f32 %v1433_v24, %v1311_v23  ;;  %v606_v26 = vpop.f32.mrb[1].mxu0 }
 0x1b2   : > { %v607_v27 = vadd.f32 %v1311_v23, %v606_v26  ;;  %v1434_v28 = vpop.f32.mrb[2].mxu0 }
 0x1b3   : > { %v627_v29 = vmul.f32 0.01, %v615_v25  ;;  %v618_v30 = vadd.f32 %v1434_v28, %v1311_v23  ;;  %v609_v31 = vpop.f32.mrb[3].mxu0  ;;  %vm623_vm0 = vcmp.gt.f32.partialorder %v615_v25, 0.0 }
 0x1b4   : > { %v625_v32 = vmul.f32 0.01, %v607_v27  ;;  %v610_v33 = vadd.f32 %v1311_v23, %v609_v31  ;;  %vm621_vm2 = vcmp.gt.f32.partialorder %v607_v27, 0.0 }
 0x1b5   : > { %vm624_vm1 = vcmp.gt.f32.partialorder %v618_v30, 0.0  ;;  %v628_v34 = vmul.f32 0.01, %v618_v30  ;;  %v631_v36 = vsel %vm623_vm0, %v615_v25, %v627_v29 }
 0x1b6   : > { %v626_v35 = vmul.f32 0.01, %v610_v33  ;;  %vm622_vm3 = vcmp.gt.f32.partialorder %v610_v33, 0.0  ;;  %v629_v38 = vsel %vm621_vm2, %v607_v27, %v625_v32  ;;  %v1655_v32 = vld [vmem:[#allocation11 + $0x28] sm:$0xff]  }
 0x1b7   : > { %v632_v37 = vsel %vm624_vm1, %v618_v30, %v628_v34  ;;  %v1657_v34 = vld [vmem:[#allocation11 + $0x38] sm:$0xff]  }
 0x1b8   : > { %v630_v39 = vsel %vm622_vm3, %v610_v33, %v626_v35  ;;  %v634_v40 = vpack.c.bf16 %v632_v37, %v631_v36  ;;  %v1656_v33 = vld [vmem:[#allocation11 + $0x30] sm:$0xff]   ;;  %v1340_v35 = vld [vmem:[%s2356_s22] ss:$0 sm:$0xff]  ;;  %s1916_s22 = smov [#allocation13]  }
 0x1b9   : > { %v633_v41 = vpack.c.bf16 %v630_v39, %v629_v38  ;;  %s1832_s30 = sshll.u32 %s1916_s22, 4  ;;  %s1833_s30 = int_to_ptr.vmem [resolvable:$false] %s1832_s30 }
 0x1ba   : > { %s1834_s29 = scalar_lea.vmem %s1833_s30, 1024  ;;  %p1835_p13 = scmp.lt.s32.totalorder %s2269_s12, %s1833_s30 }
 0x1bb   : > { %1451 = vmatprep.mubr.bf16.mxu1 %v633_v41  ;;  %p1836_p0 = scmp.lt.s32.totalorder %s1834_s29, %s1828_s28 }
 0x1bc   : > { %1452 = vmatmul.mubr.bf16.vlgmr.msra.gmra.mrb[0].mxu1 %v634_v40 }
 0x1bd   : > { %1476 = vmatpush3.bf16.msra.mxu1 %v1642_v45  ;;  %p1837_p2 = por %p1836_p0, %p1835_p13 }
 0x1be   : > { %1477 = vmatprep.subr.bf16.mxu1 %v1643_v46 }
 0x1bf   : > { %p1838_p8 = pnand %p1837_p2, %p1831_p1 }
 0x1c1   : > { %1478 = vmatpush3.bf16.msra.mxu1 %v1643_v46 }
 0x1c2   : > { %1479 = vmatprep.subr.bf16.mxu1 %v1644_v47 }
 0x1c5   : > { %1480 = vmatpush3.bf16.msra.mxu1 %v1644_v47 }
 0x1c6   : > { %1481 = vmatprep.subr.bf16.mxu1 %v1645_v48 }
 0x1c9   : > { %1482 = vmatpush3.bf16.msra.mxu1 %v1645_v48 }
 0x1ca   : > { %1483 = vmatprep.subr.bf16.mxu1 %v1646_v49 }
 0x1cd   : > { %1484 = vmatpush3.bf16.msra.mxu1 %v1646_v49 }
 0x1ce   : > { %1485 = vmatprep.subr.bf16.mxu1 %v1647_v5 }
 0x1d1   : > { %1486 = vmatpush3.bf16.msra.mxu1 %v1647_v5 }
 0x1d2   : > { %1487 = vmatprep.subr.bf16.mxu1 %v1648_v6 }
 0x1d5   : > { %1488 = vmatpush3.bf16.msra.mxu1 %v1648_v6 }
 0x1d6   : > { %1489 = vmatprep.subr.bf16.mxu1 %v1649_v7 }
 0x1d9   : > { %1490 = vmatpush3.bf16.msra.mxu1 %v1649_v7 }
 0x28f   : > { %v1453_v51 = vpop.f32.mrb[0].mxu1 }
 0x290   : > { %v748_v52 = vadd.f32 %v1453_v51, %v1322_v50  ;;  %v739_v53 = vpop.f32.mrb[1].mxu1 }
 0x291   : > { %v740_v54 = vadd.f32 %v1322_v50, %v739_v53  ;;  %v1454_v55 = vpop.f32.mrb[2].mxu1 }
 0x292   : > { %v760_v56 = vmul.f32 0.01, %v748_v52  ;;  %v751_v57 = vadd.f32 %v1454_v55, %v1322_v50  ;;  %v742_v58 = vpop.f32.mrb[3].mxu1  ;;  %vm756_vm4 = vcmp.gt.f32.partialorder %v748_v52, 0.0 }
 0x293   : > { %v758_v59 = vmul.f32 0.01, %v740_v54  ;;  %v743_v60 = vadd.f32 %v1322_v50, %v742_v58  ;;  %vm754_vm5 = vcmp.gt.f32.partialorder %v740_v54, 0.0 }
 0x294   : > { %vm757_vm6 = vcmp.gt.f32.partialorder %v751_v57, 0.0  ;;  %v761_v61 = vmul.f32 0.01, %v751_v57  ;;  %v764_v63 = vsel %vm756_vm4, %v748_v52, %v760_v56 }
 0x295   : > { %vm755_vm7 = vcmp.gt.f32.partialorder %v743_v60, 0.0  ;;  %v759_v62 = vmul.f32 0.01, %v743_v60  ;;  %v762_v2 = vsel %vm754_vm5, %v740_v54, %v758_v59  ;;  %v1349_v54 = vld [vmem:[%s2357_s25] ss:$0 sm:$0xff] }
 0x296   : > { %v765_v0 = vsel %vm757_vm6, %v751_v57, %v761_v61 }
 0x297   : > { %v767_v1 = vpack.c.bf16 %v765_v0, %v764_v63  ;;  %v763_v3 = vsel %vm755_vm7, %v743_v60, %v759_v62 }
 0x298   : > { %v766_v4 = vpack.c.bf16 %v763_v3, %v762_v2 }
 0x29a   : > { %1471 = vmatprep.mubr.bf16.mxu0 %v766_v4 }
 0x29b   : > { %1472 = vmatmul.mubr.bf16.vlgmr.msra.gmra.mrb[4].mxu0 %v767_v1 }
 0x29c   : > { %1496 = vmatpush3.bf16.msra.mxu0 %v1650_v8 }
 0x29d   : > { %1497 = vmatprep.subr.bf16.mxu0 %v1651_v9 }
 0x2a0   : > { %1498 = vmatpush3.bf16.msra.mxu0 %v1651_v9 }
 0x2a1   : > { %1499 = vmatprep.subr.bf16.mxu0 %v1652_v10 }
 0x2a4   : > { %1500 = vmatpush3.bf16.msra.mxu0 %v1652_v10 }
 0x2a5   : > { %1501 = vmatprep.subr.bf16.mxu0 %v1653_v11 }
 0x2a8   : > { %1502 = vmatpush3.bf16.msra.mxu0 %v1653_v11 }
 0x2a9   : > { %1503 = vmatprep.subr.bf16.mxu0 %v1654_v12 }
 0x2ac   : > { %1504 = vmatpush3.bf16.msra.mxu0 %v1654_v12 }
 0x2ad   : > { %1505 = vmatprep.subr.bf16.mxu0 %v1655_v32 }
 0x2b0   : > { %1506 = vmatpush3.bf16.msra.mxu0 %v1655_v32 }
 0x2b1   : > { %1507 = vmatprep.subr.bf16.mxu0 %v1656_v33 }
 0x2b4   : > { %1508 = vmatpush3.bf16.msra.mxu0 %v1656_v33 }
 0x2b5   : > { %1509 = vmatprep.subr.bf16.mxu0 %v1657_v34 }
 0x2b8   : > { %1510 = vmatpush3.bf16.msra.mxu0 %v1657_v34 }
 0x36e   : > { %v1473_v14 = vpop.f32.mrb[4].mxu0 }
 0x36f   : > { %v881_v15 = vadd.f32 %v1473_v14, %v1331_v13  ;;  %v872_v16 = vpop.f32.mrb[5].mxu0 }
 0x370   : > { %v873_v17 = vadd.f32 %v1331_v13, %v872_v16  ;;  %v1474_v18 = vpop.f32.mrb[6].mxu0 }
 0x371   : > { %v893_v19 = vmul.f32 0.01, %v881_v15  ;;  %v884_v20 = vadd.f32 %v1474_v18, %v1331_v13  ;;  %v875_v21 = vpop.f32.mrb[7].mxu0  ;;  %vm889_vm8 = vcmp.gt.f32.partialorder %v881_v15, 0.0 }
 0x372   : > { %v891_v22 = vmul.f32 0.01, %v873_v17  ;;  %v876_v23 = vadd.f32 %v1331_v13, %v875_v21  ;;  %vm887_vm9 = vcmp.gt.f32.partialorder %v873_v17, 0.0 }
 0x373   : > { %vm890_vm10 = vcmp.gt.f32.partialorder %v884_v20, 0.0  ;;  %v894_v24 = vmul.f32 0.01, %v884_v20  ;;  %v897_v26 = vsel %vm889_vm8, %v881_v15, %v893_v19 }
 0x374   : > { %vm888_vm11 = vcmp.gt.f32.partialorder %v876_v23, 0.0  ;;  %v892_v25 = vmul.f32 0.01, %v876_v23  ;;  %v895_v29 = vsel %vm887_vm9, %v873_v17, %v891_v22 }
 0x375   : > { %v898_v27 = vsel %vm890_vm10, %v884_v20, %v894_v24 }
 0x376   : > { %v900_v28 = vpack.c.bf16 %v898_v27, %v897_v26  ;;  %v896_v30 = vsel %vm888_vm11, %v876_v23, %v892_v25 }
 0x377   : > { %v899_v31 = vpack.c.bf16 %v896_v30, %v895_v29 }
 0x379   : > { %1491 = vmatprep.mubr.bf16.mxu1 %v899_v31 }
 0x37a   : > { %1492 = vmatmul.mubr.bf16.vlgmr.msra.gmra.mrb[4].mxu1 %v900_v28 }
 0x44d   : > { %v1493_v36 = vpop.f32.mrb[4].mxu1 }
 0x44e   : > { %v1014_v37 = vadd.f32 %v1493_v36, %v1340_v35  ;;  %v1005_v38 = vpop.f32.mrb[5].mxu1 }
 0x44f   : > { %v1006_v39 = vadd.f32 %v1340_v35, %v1005_v38  ;;  %v1494_v40 = vpop.f32.mrb[6].mxu1 }
 0x450   : > { %v1026_v41 = vmul.f32 0.01, %v1014_v37  ;;  %v1017_v42 = vadd.f32 %v1494_v40, %v1340_v35  ;;  %v1008_v43 = vpop.f32.mrb[7].mxu1  ;;  %vm1022_vm12 = vcmp.gt.f32.partialorder %v1014_v37, 0.0 }
 0x451   : > { %v1024_v44 = vmul.f32 0.01, %v1006_v39  ;;  %v1009_v45 = vadd.f32 %v1340_v35, %v1008_v43  ;;  %vm1020_vm13 = vcmp.gt.f32.partialorder %v1006_v39, 0.0 }
 0x452   : > { %vm1023_vm14 = vcmp.gt.f32.partialorder %v1017_v42, 0.0  ;;  %v1027_v46 = vmul.f32 0.01, %v1017_v42  ;;  %v1030_v48 = vsel %vm1022_vm12, %v1014_v37, %v1026_v41 }
 0x453   : > { %vm1021_vm15 = vcmp.gt.f32.partialorder %v1009_v45, 0.0  ;;  %v1025_v47 = vmul.f32 0.01, %v1009_v45  ;;  %v1028_v51 = vsel %vm1020_vm13, %v1006_v39, %v1024_v44 }
 0x454   : > { %v1031_v49 = vsel %vm1023_vm14, %v1017_v42, %v1027_v46 }
 0x455   : > { %v1033_v50 = vpack.c.bf16 %v1031_v49, %v1030_v48  ;;  %v1029_v52 = vsel %vm1021_vm15, %v1009_v45, %v1025_v47 }
 0x456   : > { %v1032_v53 = vpack.c.bf16 %v1029_v52, %v1028_v51 }
 0x458   : > { %1511 = vmatprep.mubr.bf16.mxu0 %v1032_v53 }
 0x459   : > { %1512 = vmatmul.mubr.bf16.vlgmr.msra.gmra.mrb[8].mxu0 %v1033_v50 }
 0x52c   : > { %v1513_v55 = vpop.f32.mrb[8].mxu0 }
 0x52d   : > { %v1147_v56 = vadd.f32 %v1513_v55, %v1349_v54  ;;  %v1138_v57 = vpop.f32.mrb[9].mxu0 }
 0x52e   : > { %v1139_v58 = vadd.f32 %v1349_v54, %v1138_v57  ;;  %v1514_v59 = vpop.f32.mrb[10].mxu0 }
 0x52f   : > { %1155 = vst [vmem:[%s477_s24 + $0x10] sm:$0xff] %v1147_v56  ;;  %v1150_v60 = vadd.f32 %v1514_v59, %v1349_v54  ;;  %v1141_v61 = vpop.f32.mrb[11].mxu0 }
 0x530   : > { %1153 = vst [vmem:[%s477_s24] sm:$0xff] %v1139_v58  ;;  %v1142_v62 = vadd.f32 %v1349_v54, %v1141_v61 }
 0x531   : > { %1156 = vst [vmem:[%s477_s24 + $0x18] sm:$0xff] %v1150_v60 }
 0x532   : > { %1154 = vst [vmem:[%s477_s24 + $0x8] sm:$0xff] %v1142_v62 }
 0x533   : > { %1841 = shalt.err (!%p1838_p8)
}
 0x534   : > { %s1842_s15 = scalar_lea.hbm %s2274_s8, 512  ;;  %s1846_s13 = scalar_lea.hbm %s2358_s27, 1024 }
 0x535   : > { %p1843_p6 = scmp.ne.s32.totalorder %s2274_s8, %s1842_s15  ;;  %p1847_p3 = scmp.lt.u32.totalorder %s2274_s8, %s2358_s27 }
 0x536   : > { %p1848_p5 = scmp.lt.u32.totalorder %s1846_s13, %s1842_s15  ;;  %p1850_p7 = scmp.lt.u32.totalorder %s1842_s15, %s2274_s8 }
 0x537   : > { %p1844_p10 = pnand %p1843_p6, %p2359_p4 }
 0x538   : > { %p1849_p9 = por %p1848_p5, %p1847_p3 }
 0x539   : > { %p1845_p11 = pneg %p1844_p10 }
 0x53a   : > { %p1851_p12 = por %p1850_p7, %p1849_p9 }
 0x53c   : > { %p1852_p1 = pnand %p1851_p12, %p1845_p11 }
 0x53e   : > { %1855 = shalt.err (!%p1852_p1)
}
 0x53f   : > { %s1917_s28 = smov 128   ;;  %s1918_s22 = smov 8  }
 0x540   : > { %1537 = dma.vmem_to_hbm [thread:$0]  (%p2359_p4), %s2269_s12, 512, %s2274_s8, %s1158_s23, %s1917_s28, %s1917_s28, %s1918_s22  }
 0x541 PF: > { %s1186_s30 = sand.u32 1, %s1894_s17   ;;  %p2360_p13 = scmp.ne.s32.totalorder %s2346_s21, 0 }
 0x542   : > { %p2361_p0 = scmp.ge.s32.totalorder %s1906_s20, 2  ;;  %s1187_s29 = scalar_lea.sflag [#allocation4], %s1186_s30 }
 0x544   : > { %p1560_p2 = pnand %p2361_p0, %p2360_p13 }
 0x546   : > { %1889 = dma.done.wait (!%p1560_p2), %s1187_s29, 512  }
 0x547   : > { %1891 = vsyncadd (!%p1560_p2), %s1187_s29, 4294966784  ;;  %p27_p8 = scmp.ge.s32.totalorder %s2152_s16, 4   ;;  %s2362_s17 = smov %s1898_s18 }
 0x548   : > { %s2363_s18 = smov %s1902_s19  ;;  %s2364_s19 = smov %s2164_s10 }
 0x549   : > { %s2365_s20 = smov %s2152_s16  ;;  %29 = sbr.rel (!%p27_p8) target bundleno = 13 (0xd), region = 129 }
 0x550   :  { %1192 = vsyncpa [#allocation3], 1 }
 0x551   :  { %1194 = vsyncpa [#allocation3 + $0x1], 1 }
 0x552   :  { %1195 = vsyncpa [#allocation6], 1 }
 0x553   :  { %1196 = vsyncpa [#allocation9], 1 }
 0x554   :  { %1197 = vsyncpa [#allocation12], 1 }
 0x555   :  { %1198 = vsyncpa [#allocation4], 1 }
 0x556   :  { %1200 = vsyncpa [#allocation4 + $0x1], 1 }

</bundles_post_ra>
